<compile_context>
chip_gen: v6e
topology: v6e:2x2x1
jax: 0.10.0
libtpu: 0.0.40
codegen_flags: <defaults>
</compile_context>

<pallas_src>
import jax
import jax.numpy as jnp
from jax import lax
from jax.experimental import pallas as pl
from jax.experimental.pallas import tpu as pltpu

SELU_ALPHA = 1.6732632423543772848170429916717
SELU_SCALE = 1.0507009873554804934193349852946
ENTMAX_N_ITER = 50  # matches entmax_bisect default n_iter (reference only)


def _relation_gat_kernel(ars_t_ref, dt_ref, out_ref):
    """One batch tile:  out^T tile = normalize(selu(A_rs^T @ D^T[:, tile]))."""
    # rel^T tile = (H, B) @ (B, BT) -> (H, BT); f32 accumulation on the MXU.
    rel_t = jnp.dot(ars_t_ref[...], dt_ref[...],
                    preferred_element_type=jnp.float32)
    # selu
    c = SELU_SCALE * jnp.where(rel_t > 0.0, rel_t,
                               SELU_ALPHA * (jnp.exp(rel_t) - 1.0))
    # L2-normalize over the hidden dim (sublane axis in this layout).
    out_ref[...] = c * lax.rsqrt(jnp.sum(c * c, axis=0, keepdims=True))


def _pick_batch_tile(B, itemsize):
    """Largest tile whose double-buffered D^T column block fits the VMEM
    budget (cap 512), keeping grid length >= 2 when possible (two v7x TCs)."""
    vmem_budget = 40 * 1024 * 1024            # headroom below the 48 MiB limit
    cap = max(128, (vmem_budget // (2 * B * itemsize)) // 128 * 128)
    bt = min(512, cap)
    while bt > 128 and (B % bt != 0 or B // bt < 2):
        bt -= 128
    if B % bt != 0:
        bt = B                                 # small / odd B: single full tile
    return bt


def relation_gat_forward(item_embedding, items, A, D, target_embedding, params,
                         *, batch_tile=None, gcn_dtype=jnp.bfloat16):
    # NOTE: target_embedding and params (w_f, alpha_w, atten_w0/w1/w2, bias) do
    # not affect this forward's output: k = v = relation_emb_gcn is constant
    # over the sequence dim, so the entmax attention collapses to the identity
    # (c == relation_emb_gcn).  Validated against reference_forward below.
    del target_embedding, params

    B, S = items.shape
    H = item_embedding.shape[1]

    # XLA glue (fused by the compiler): gather + sum over S, then the
    # reassociated (B,B)@(B,H) matmul A_rs = A @ rel_sum.
    rel_sum = jnp.sum(jnp.take(item_embedding, items, axis=0),
                      axis=1).astype(jnp.float32)                     # (B, H)
    a_rs = jnp.dot(A.astype(jnp.float32), rel_sum)                    # (B, H)

    # Layout plumbing (cheap / fused copies):
    #   * a_rs^T  -> small resident kernel operand            (H, B)
    #   * D^T     -> transpose fused into the bf16 cast copy  (B, B)
    a_rs_t = a_rs.T.astype(gcn_dtype)
    d_t = D.T.astype(gcn_dtype)

    if batch_tile is None:
        batch_tile = _pick_batch_tile(B, jnp.dtype(gcn_dtype).itemsize)
    # TODO(synk): ragged last tile (B % batch_tile != 0) needs a masked path.
    assert B % batch_tile == 0, (B, batch_tile)
    grid = (B // batch_tile,)

    out_t = pl.pallas_call(
        _relation_gat_kernel,
        out_shape=jax.ShapeDtypeStruct((H, B), jnp.float32),
        grid=grid,
        in_specs=[
            pl.BlockSpec((H, B), lambda i: (0, 0)),            # A_rs^T (resident)
            pl.BlockSpec((B, batch_tile), lambda i: (0, i)),   # D^T column block
        ],
        out_specs=pl.BlockSpec((H, batch_tile), lambda i: (0, i)),
        compiler_params=pltpu.CompilerParams(
            dimension_semantics=("parallel",),
            vmem_limit_bytes=48 * 1024 * 1024,
        ),
    )(a_rs_t, d_t)

    return out_t.T                                                    # (B, H)


def reference_forward(item_embedding, items, A, D, target_embedding, params):
    """Pure-JAX mirror of the PyTorch forward (incl. the entmax bisection)."""
    B, S = items.shape
    H = item_embedding.shape[1]
    seq_h = jnp.take(item_embedding, items, axis=0)
    rel = jnp.dot(jnp.dot(D, A), jnp.sum(seq_h, axis=1))              # (B, H)
    target_emb = (jnp.dot(target_embedding.reshape(B, H), params["wf_w"].T)
                  + params["wf_b"])
    alpha_g = jax.nn.sigmoid(jnp.dot(target_emb, params["aw_w"].T)
                             + params["aw_b"]) + 1.0
    alpha_g = jnp.where(alpha_g == 1.0, 1.00001, alpha_g)             # (B, 1)

    k3 = jnp.broadcast_to(rel[:, None, :], (B, S, H))
    hid = jax.nn.relu(jnp.einsum("bsh,hk->bsk", k3, params["w1"])
                      + jnp.einsum("bh,hk->bk", target_emb, params["w2"])[:, None, :]
                      + params["ab"])
    logits = jnp.einsum("bsh,h->bs", hid, params["w0"][0])            # (B, S)

    am1 = alpha_g - 1.0
    inv_am1 = 1.0 / am1
    Xs = logits * am1
    max_val = jnp.max(Xs, axis=1, keepdims=True)
    tau_lo = max_val - 1.0
    tau_hi = max_val - (1.0 / S) ** am1
    f_lo = jnp.sum(jnp.maximum(Xs - tau_lo, 0.0) ** inv_am1,
                   axis=1, keepdims=True) - 1.0
    dm = tau_hi - tau_lo
    p = jnp.zeros_like(Xs)
    for _ in range(ENTMAX_N_ITER):
        dm = dm * 0.5
        tau_m = tau_lo + dm
        p = jnp.maximum(Xs - tau_m, 0.0) ** inv_am1
        f_m = jnp.sum(p, axis=1, keepdims=True) - 1.0
        tau_lo = jnp.where(f_m * f_lo >= 0.0, tau_m, tau_lo)
    p = p / jnp.sum(p, axis=1, keepdims=True)

    c = jnp.einsum("bs,bsh->bh", p, k3)
    c = SELU_SCALE * jnp.where(c > 0.0, c, SELU_ALPHA * (jnp.exp(c) - 1.0))
    return c / jnp.linalg.norm(c, axis=-1, keepdims=True)


if __name__ == "__main__":
    B, S, H, N_ITEMS = 8, 8, 32, 64
    key = jax.random.PRNGKey(0)
    ks = jax.random.split(key, 12)

    item_embedding = jax.random.normal(ks[0], (N_ITEMS, H), jnp.float32)
    items = jax.random.randint(ks[1], (B, S), 0, N_ITEMS, jnp.int32)
    A = jax.random.uniform(ks[2], (B, B), jnp.float32)
    D = jax.random.uniform(ks[3], (B, B), jnp.float32)
    target_embedding = jax.random.normal(ks[4], (B, 1, H), jnp.float32)

    params = dict(
        wf_w=jax.random.normal(ks[5], (H, H), jnp.float32) * 0.1,   # nn.Linear(H, H)
        wf_b=jax.random.normal(ks[6], (H,), jnp.float32) * 0.1,
        aw_w=jax.random.normal(ks[7], (1, H), jnp.float32) * 0.1,   # nn.Linear(H, 1)
        aw_b=jax.random.normal(ks[8], (1,), jnp.float32) * 0.1,
        w0=jax.random.normal(ks[9], (1, H), jnp.float32) * 0.1,     # atten_w0
        w1=jax.random.normal(ks[10], (H, H), jnp.float32) * 0.1,    # atten_w1
        w2=jax.random.normal(ks[11], (H, H), jnp.float32) * 0.1,    # atten_w2
        ab=jnp.full((H,), 0.01, jnp.float32),                       # atten_bias
    )

    ref = reference_forward(item_embedding, items, A, D, target_embedding, params)

    # f32 D stream: tight check against the full (entmax-bisection) reference.
    out_f32 = relation_gat_forward(item_embedding, items, A, D,
                                   target_embedding, params,
                                   gcn_dtype=jnp.float32)
    out_f32 = jax.block_until_ready(out_f32)
    assert out_f32.shape == (B, H)
    assert bool(jnp.all(jnp.isfinite(out_f32)))
    assert jnp.allclose(out_f32, ref, atol=2e-3, rtol=2e-3), \
        float(jnp.max(jnp.abs(out_f32 - ref)))

    # Production path: bf16 D stream (halved HBM traffic), looser tolerance.
    out_bf16 = relation_gat_forward(item_embedding, items, A, D,
                                    target_embedding, params)
    out_bf16 = jax.block_until_ready(out_bf16)
    assert out_bf16.shape == (B, H)
    assert bool(jnp.all(jnp.isfinite(out_bf16)))
    assert jnp.allclose(out_bf16, ref, atol=2e-2, rtol=2e-2), \
        float(jnp.max(jnp.abs(out_bf16 - ref)))

    print("KERNEL_OK")
</pallas_src>

<mosaic_0001>
module attributes {stable_mosaic.version = 11 : i64} {
  func.func @_relation_gat_kernel(%arg0: i32, %arg1: memref<32x8xf32, #tpu.memory_space<vmem>>, %arg2: memref<8x8xf32, #tpu.memory_space<vmem>>, %arg3: memref<32x8xf32, #tpu.memory_space<vmem>>) attributes {dimension_semantics = [#tpu.dimension_semantics<parallel>], iteration_bounds = array<i64: 1>, scalar_prefetch = 0 : i64, scratch_operands = 0 : i64, tpu.core_type = #tpu.core_type<tc>, window_params = [{pipeline_mode = #tpu.pipeline_mode<synchronous>, transform_indices = @transform_0, window_bounds = array<i64: 32, 8>}, {transform_indices = @transform_1, window_bounds = array<i64: 8, 8>}, {transform_indices = @transform_2, window_bounds = array<i64: 32, 8>}]} {
    %c0 = arith.constant 0 : index
    %c0_0 = arith.constant 0 : index
    %0 = vector.load %arg1[%c0, %c0_0] : memref<32x8xf32, #tpu.memory_space<vmem>>, vector<32x8xf32>
    %c0_1 = arith.constant 0 : index
    %c0_2 = arith.constant 0 : index
    %1 = vector.load %arg2[%c0_1, %c0_2] : memref<8x8xf32, #tpu.memory_space<vmem>>, vector<8x8xf32>
    %cst = arith.constant dense<0.000000e+00> : vector<32x8xf32>
    %2 = tpu.matmul %0, %1, %cst {dimension_numbers = #tpu.dot_dimension_numbers<[1], [0], [0], [1], [0, 0, 1, 1], [], []>} : vector<32x8xf32>, vector<8x8xf32>, vector<32x8xf32> -> vector<32x8xf32>
    %cst_3 = arith.constant 0.000000e+00 : f32
    %3 = vector.broadcast %cst_3 : f32 to vector<32x8xf32>
    %4 = arith.cmpf ogt, %2, %3 : vector<32x8xf32>
    %5 = math.exp %2 : vector<32x8xf32>
    %cst_4 = arith.constant 1.000000e+00 : f32
    %6 = vector.broadcast %cst_4 : f32 to vector<32x8xf32>
    %7 = arith.subf %5, %6 : vector<32x8xf32>
    %cst_5 = arith.constant 1.67326319 : f32
    %8 = vector.broadcast %cst_5 : f32 to vector<32x8xf32>
    %9 = arith.mulf %8, %7 : vector<32x8xf32>
    %10 = arith.select %4, %2, %9 : vector<32x8xi1>, vector<32x8xf32>
    %cst_6 = arith.constant 1.05070102 : f32
    %11 = vector.broadcast %cst_6 : f32 to vector<32x8xf32>
    %12 = arith.mulf %11, %10 : vector<32x8xf32>
    %13 = arith.mulf %12, %12 : vector<32x8xf32>
    %cst_7 = arith.constant dense<0.000000e+00> : vector<8xf32>
    %14 = vector.multi_reduction <add>, %13, %cst_7 [0] : vector<32x8xf32> to vector<8xf32>
    %15 = vector.shape_cast %14 : vector<8xf32> to vector<1x8xf32>
    %16 = math.rsqrt %15 : vector<1x8xf32>
    %17 = vector.broadcast %16 : vector<1x8xf32> to vector<32x8xf32>
    %18 = arith.mulf %12, %17 : vector<32x8xf32>
    %c0_8 = arith.constant 0 : index
    %c0_9 = arith.constant 0 : index
    %19 = vector.load %arg3[%c0_8, %c0_9] : memref<32x8xf32, #tpu.memory_space<vmem>>, vector<32x8xf32>
    tpu.vector_store %arg3[%c0_8, %c0_9], %18 {strides = array<i32>} : memref<32x8xf32, #tpu.memory_space<vmem>>, vector<32x8xf32>,
    return
  }
  func.func @transform_0(%arg0: i32) -> (i32, i32) {
    %c0_i32 = arith.constant 0 : i32
    %c0_i32_0 = arith.constant 0 : i32
    %c0_i32_1 = arith.constant 0 : i32
    return %c0_i32, %c0_i32_0 : i32, i32
  }
  func.func @transform_1(%arg0: i32) -> (i32, i32) {
    %c0_i32 = arith.constant 0 : i32
    %c0_i32_0 = arith.constant 0 : i32
    return %c0_i32, %arg0 : i32, i32
  }
  func.func @transform_2(%arg0: i32) -> (i32, i32) {
    %c0_i32 = arith.constant 0 : i32
    %c0_i32_0 = arith.constant 0 : i32
    return %c0_i32, %arg0 : i32, i32
  }
}

</mosaic_0001>

<bundles_post_ra>
// kernel: tpu_custom_call.1
= control target key start
LH: loop header
LB: loop body
LE: loop exit
PB: predicated region body
PF: predicated region fallthrough
CT: control target
= control target key end

     0   :  { %vm16_vm0 = vcmask 64512   ;;  %s259_s1 = inlined_call_operand.vmem [shape: f32[8,8], index: 1, kind: input, shape index: {}]   ;;  %s260_s0 = inlined_call_operand.vmem [shape: f32[32,8], index: 0, kind: input, shape index: {}]   ;;  %s261_s2 = inlined_call_operand.vmem [shape: f32[32,8], index: 2, kind: output, shape index: {}]  }
   0x1   :  { %v15_v0 = vld [vmem:[%s259_s1] sm:$0xff]  ;;  %v13_v2 = vld [vmem:[%s260_s0 + $0x10] sm:$0xff]  ;;  %v12_v3 = vld [vmem:[%s260_s0 + $0x8] sm:$0xff] }
   0x2   :  { %v11_v1 = vld [vmem:[%s260_s0] sm:$0xff]  ;;  %185 = vmatprep.subr.mxu0 %v15_v0  ;;  %193 = vmatprep.subr.mxu1 %v15_v0  ;;  %v14_v4 = vld [vmem:[%s260_s0 + $0x18] sm:$0xff] }
   0x3   :  { %186 = vmatpush3.msra.mxu0 %v15_v0  ;;  %194 = vmatpush3.msra.mxu1 %v15_v0 }
   0x4   :  { %187 = vmatprep.mubr.msk.f32.mxu0 %vm16_vm0, %v11_v1  ;;  %190 = vmatprep.mubr.msk.f32.mxu1 %vm16_vm0, %v13_v2 }
   0x5   :  { %188 = vmatmul.mubr.msk.f32.vlgmr.msra.gmra.mxu0 %vm16_vm0, %v12_v3  ;;  %191 = vmatmul.mubr.msk.f32.vlgmr.msra.gmra.mxu1 %vm16_vm0, %v14_v4 }
  0xc5   :  { %v189_v5 = vpop.f32.mrf.mxu0  ;;  %v192_v6 = vpop.f32.mrf.mxu1 }
  0xc6   :  { %v120_v7 = vmul.f32 1.442695, %v189_v5  ;;  %v124_v8 = vmul.f32 1.442695, %v192_v6  ;;  %vm115_vm1 = vcmp.gt.f32.partialorder %v189_v5, 0.0  ;;  %vm117_vm2 = vcmp.gt.f32.partialorder %v192_v6, 0.0 }
  0xc7   :  { %v95_v9 = vpop.f32.mrf.mxu0  ;;  %v105_v10 = vpop.f32.mrf.mxu1 }
  0xc8   :  { %195 = vpow2.f32 %v120_v7  ;;  %v118_v11 = vmul.f32 1.442695, %v95_v9  ;;  %v122_v12 = vmul.f32 1.442695, %v105_v10  ;;  %vm114_vm3 = vcmp.gt.f32.partialorder %v95_v9, 0.0 }
  0xc9   :  { %197 = vpow2.f32 %v124_v8  ;;  %vm116_vm4 = vcmp.gt.f32.partialorder %v105_v10, 0.0 }
  0xca   :  { %199 = vpow2.f32 %v118_v11 }
  0xcb   :  { %201 = vpow2.f32 %v122_v12 }
  0xd5   :  { %v196_v13 = vpop.eup %195 }
  0xd6   :  { %v198_v14 = vpop.eup %197  ;;  %v177_v15 = vadd.f32 -1.0, %v196_v13 }
  0xd7   :  { %v200_v16 = vpop.eup %199  ;;  %v179_v17 = vadd.f32 -1.0, %v198_v14 }
  0xd8   :  { %v202_v18 = vpop.eup %201  ;;  %v131_v19 = vmul.f32 1.6732632, %v177_v15  ;;  %v176_v20 = vadd.f32 -1.0, %v200_v16 }
  0xd9   :  { %v133_v21 = vmul.f32 1.6732632, %v179_v17  ;;  %v178_v22 = vadd.f32 -1.0, %v202_v18 }
  0xda   :  { %v135_v23 = vsel %vm115_vm1, %v189_v5, %v131_v19  ;;  %v130_v24 = vmul.f32 1.6732632, %v176_v20 }
  0xdb   :  { %v139_v25 = vmul.f32 1.050701, %v135_v23  ;;  %v137_v26 = vsel %vm117_vm2, %v192_v6, %v133_v21  ;;  %v132_v27 = vmul.f32 1.6732632, %v178_v22 }
  0xdc   :  { %v134_v28 = vsel %vm114_vm3, %v95_v9, %v130_v24  ;;  %v141_v30 = vmul.f32 1.050701, %v137_v26 }
  0xdd   :  { %v143_v29 = vmul.f32 %v139_v25, %v139_v25  ;;  %v138_v31 = vmul.f32 1.050701, %v134_v28  ;;  %v136_v32 = vsel %vm116_vm4, %v105_v10, %v132_v27 }
  0xde   :  { %v140_v33 = vmul.f32 1.050701, %v136_v32  ;;  %v145_v37 = vmul.f32 %v141_v30, %v141_v30 }
  0xdf   :  { %v142_v34 = vmul.f32 %v138_v31, %v138_v31  ;;  %v147_v36 = vsel %vm16_vm0, %v143_v29, 0.0 }
  0xe0   :  { %v144_v35 = vmul.f32 %v140_v33, %v140_v33  ;;  %v151_v42 = vsel %vm16_vm0, %v145_v37, 0.0 }
  0xe1   :  { %v146_v38 = vsel %vm16_vm0, %v142_v34, 0.0 }
  0xe2   :  { %v148_v39 = vadd.f32 %v147_v36, %v146_v38  ;;  %v149_v40 = vsel %vm16_vm0, %v144_v35, 0.0 }
  0xe4   :  { %v150_v41 = vadd.f32 %v149_v40, %v148_v39 }
  0xe6   :  { %v152_v43 = vadd.f32 %v151_v42, %v150_v41 }
  0xe8   :  { %v153_v44 = vrot.slane %v152_v43, 4 }
  0xea   :  { %v154_v45 = vadd.f32 %v153_v44, %v152_v43 }
  0xec   :  { %v155_v46 = vrot.slane %v154_v45, 2 }
  0xee   :  { %v156_v47 = vadd.f32 %v155_v46, %v154_v45 }
  0xf0   :  { %v157_v48 = vrot.slane %v156_v47, 1 }
  0xf2   :  { %v158_v49 = vadd.f32 %v157_v48, %v156_v47 }
  0xf4   :  { %203 = vrsqrt.f32 %v158_v49 }
 0x101   :  { %v204_v50 = vpop.eup %203 }
 0x102   :  { %v160_v51 = vmul.f32 %v204_v50, %v138_v31  ;;  %v161_v52 = vmul.f32 %v204_v50, %v139_v25  ;;  %v162_v53 = vmul.f32 %v204_v50, %v140_v33  ;;  %v163_v54 = vmul.f32 %v204_v50, %v141_v30 }
 0x104   :  { %164 = vst.msk [vmem:[%s261_s2] sm:$0xff] %vm16_vm0, %v160_v51  ;;  %165 = vst.msk [vmem:[%s261_s2 + $0x8] sm:$0xff] %vm16_vm0, %v161_v52 }
 0x105   :  { %166 = vst.msk [vmem:[%s261_s2 + $0x10] sm:$0xff] %vm16_vm0, %v162_v53  ;;  %167 = vst.msk [vmem:[%s261_s2 + $0x18] sm:$0xff] %vm16_vm0, %v163_v54 }

</bundles_post_ra>
